<compile_context>
chip_gen: v6e
topology: v6e:2x2x1
jax: 0.10.0
libtpu: 0.0.40
codegen_flags: <defaults>
</compile_context>

<pallas_src>
import jax
import jax.numpy as jnp
from jax import lax
from jax.experimental import pallas as pl
from jax.experimental.pallas import tpu as pltpu


def _round_up(x, m):
    return (x + m - 1) // m * m


def pack_yukarin_s_params(params):
    """Pack every predictor parameter into ONE lane-aligned f32 block (done once).

    Layout (R = max(CIN, H) sublanes):
      [:,           0 : ke_blk ]  block-diag [phoneme | speaker] embed, channel-major
      [:,      off_w1 : +3R    ]  conv1 weight, W1[h, k*R + c] = w1[k, c, h]
      [:,      off_w2 : +3R    ]  conv2 weight, W2[h, k*R + c] = w2[k, c, h]
      [:,       off_v          ]  b1 column
      [:,       off_v + 1      ]  b2 column
      [0,       off_v + 2      ]  bp scalar
      [0, off_v + 8 : +H       ]  wp row (post conv weight)
    All block starts are multiples of 128 lanes -> relayout-free static slices.
    """
    ph_tbl = jnp.asarray(params["phoneme_embed"], jnp.float32)   # (V, E)
    sp_tbl = jnp.asarray(params["speaker_embed"], jnp.float32)   # (SPK, S)
    w1 = jnp.asarray(params["w1"], jnp.float32)                  # (3, CIN, H)
    w2 = jnp.asarray(params["w2"], jnp.float32)                  # (3, H, H)
    b1 = jnp.asarray(params["b1"], jnp.float32).reshape(-1)      # (H,)
    b2 = jnp.asarray(params["b2"], jnp.float32).reshape(-1)      # (H,)
    wp = jnp.asarray(params["wp"], jnp.float32).reshape(-1)      # (H,)
    bp = jnp.asarray(params["bp"], jnp.float32).reshape(-1)      # (1,)

    V, E = ph_tbl.shape
    SPK, S = sp_tbl.shape
    CIN = E + S
    H = w1.shape[2]
    R = max(CIN, H)

    ke_blk = _round_up(V + SPK, 128)
    c_blk = _round_up(3 * R, 128)
    off_w1 = ke_blk
    off_w2 = off_w1 + c_blk
    off_v = off_w2 + c_blk
    wtot = off_v + 128

    wmat = jnp.zeros((R, wtot), jnp.float32)
    # block-diagonal [phoneme | speaker] embedding table, channel-major
    wmat = wmat.at[:E, :V].set(ph_tbl.T)
    wmat = wmat.at[E:CIN, V:V + SPK].set(sp_tbl.T)
    # conv weights, channel-major im2col layout
    for k in range(3):
        wmat = wmat.at[:H, off_w1 + k * R: off_w1 + k * R + CIN].set(w1[k].T)
        wmat = wmat.at[:H, off_w2 + k * R: off_w2 + k * R + H].set(w2[k].T)
    # bias / head block
    wmat = wmat.at[:H, off_v].set(b1)
    wmat = wmat.at[:H, off_v + 1].set(b2)
    wmat = wmat.at[0, off_v + 2].set(bp[0])
    wmat = wmat.at[0, off_v + 8: off_v + 8 + H].set(wp)

    cfg = dict(V=V, SPK=SPK, R=R, ke_blk=ke_blk,
               off_w1=off_w1, off_w2=off_w2, off_v=off_v, wtot=wtot)
    return wmat, cfg


def _build_kernel(cfg, l_real, l_pad):
    V = cfg["V"]
    R = cfg["R"]
    ke_blk = cfg["ke_blk"]
    off_w1 = cfg["off_w1"]
    off_w2 = cfg["off_w2"]
    off_v = cfg["off_v"]

    def kernel(spk_sref, phon_ref, wmat_ref, o_ref):
        # speaker id: scalar read from SMEM (scalar prefetch), no one-hot matmul
        # of its own - it is folded into the combined one-hot below.
        spk = spk_sref[0]

        # ---- fused phoneme+speaker embedding gather ----
        # one-hot over the block-diag vocab [0..V) = phonemes, [V..V+SPK) = speaker
        row = lax.broadcasted_iota(jnp.int32, (ke_blk, l_pad), 0)
        ids = jnp.where(row < V, phon_ref[...], spk + V)          # (ke_blk, Lp)
        onehot = (ids == row).astype(jnp.float32)
        x = jnp.dot(wmat_ref[:, 0:ke_blk], onehot,
                    preferred_element_type=jnp.float32)           # (R, Lp)

        # boundary masks (lane-dense, static l_real)
        lane = lax.broadcasted_iota(jnp.int32, (R, l_pad), 1)
        not_first = lane != 0
        not_last = lane != (l_real - 1)

        def taps(v):
            # value at t-1 (zero left pad) / t+1 (zero right pad) via XLU lane rolls
            prev = jnp.where(not_first, pltpu.roll(v, shift=1, axis=1), 0.0)
            nxt = jnp.where(not_last,
                            pltpu.roll(v, shift=l_pad - 1, axis=1), 0.0)
            return prev, nxt

        # ---- encoder conv #1: (H, 3R) @ (3R, Lp) + ReLU ----
        xm1, xp1 = taps(x)
        col1 = jnp.concatenate([xm1, x, xp1], axis=0)             # (3R, Lp)
        h1 = jnp.maximum(
            jnp.dot(wmat_ref[:, off_w1:off_w1 + 3 * R], col1,
                    preferred_element_type=jnp.float32)
            + wmat_ref[:, off_v:off_v + 1], 0.0)                  # (R, Lp)

        # ---- encoder conv #2 ----
        hm1, hp1 = taps(h1)
        col2 = jnp.concatenate([hm1, h1, hp1], axis=0)            # (3R, Lp)
        h2 = jnp.maximum(
            jnp.dot(wmat_ref[:, off_w2:off_w2 + 3 * R], col2,
                    preferred_element_type=jnp.float32)
            + wmat_ref[:, off_v + 1:off_v + 2], 0.0)              # (R, Lp)

        # ---- post conv (H -> 1): (1, R) @ (R, Lp), lane-dense output ----
        wp_row = wmat_ref[0:1, off_v + 8:off_v + 8 + R]           # (1, R)
        bp = wmat_ref[0:1, off_v + 2:off_v + 3]                   # (1, 1)
        o_ref[...] = jnp.dot(wp_row, h2,
                             preferred_element_type=jnp.float32) + bp

    return kernel


def yukarin_s_forward(phoneme_list, speaker_id, packed):
    """Equivalent of WrapperYukarinS.forward.  Returns float32[L]."""
    wmat, cfg = packed
    R, wtot = wmat.shape
    l_real = int(phoneme_list.shape[0])
    l_pad = _round_up(max(l_real, 1), 128)        # lane-dense, unmasked stores

    phon = jnp.zeros((1, l_pad), jnp.int32).at[0, :l_real].set(
        phoneme_list.astype(jnp.int32))
    spk = speaker_id.astype(jnp.int32).reshape(1)

    kernel = _build_kernel(cfg, l_real, l_pad)

    out = pl.pallas_call(
        kernel,
        out_shape=jax.ShapeDtypeStruct((1, l_pad), jnp.float32),
        grid_spec=pltpu.PrefetchScalarGridSpec(
            num_scalar_prefetch=1,                 # speaker id -> SMEM
            grid=(1,),
            in_specs=[pl.BlockSpec((1, l_pad), lambda i, s: (0, 0)),
                      pl.BlockSpec((R, wtot), lambda i, s: (0, 0))],
            out_specs=pl.BlockSpec((1, l_pad), lambda i, s: (0, 0)),
        ),
        compiler_params=pltpu.CompilerParams(
            dimension_semantics=("arbitrary",)),
    )(spk, phon, wmat)

    return out[0, :l_real]                        # (L,)


def _reference(phoneme_list, speaker_id, params):
    """Pure-JAX reference of the same forward pass."""
    L = phoneme_list.shape[0]
    ph = params["phoneme_embed"][phoneme_list]
    sp = jnp.broadcast_to(params["speaker_embed"][speaker_id[0]][None, :],
                          (L, params["speaker_embed"].shape[1]))
    h = jnp.concatenate([ph, sp], axis=-1)

    def conv3(hx, w, b):
        hp = jnp.pad(hx, ((1, 1), (0, 0)))
        acc = jnp.broadcast_to(b, (L, w.shape[2]))
        for k in range(3):
            acc = acc + hp[k:k + L] @ w[k]
        return acc

    h1 = jnp.maximum(conv3(h, params["w1"], params["b1"]), 0.0)
    h2 = jnp.maximum(conv3(h1, params["w2"], params["b2"]), 0.0)
    return (h2 @ params["wp"] + params["bp"])[:, 0]


if __name__ == "__main__":
    PHONEME_SIZE, PHONEME_EMB = 45, 16
    SPEAKER_SIZE, SPEAKER_EMB = 4, 16
    HIDDEN = 32
    CIN = PHONEME_EMB + SPEAKER_EMB

    key = jax.random.PRNGKey(0)
    ks = jax.random.split(key, 8)
    params = dict(
        phoneme_embed=0.1 * jax.random.normal(ks[0], (PHONEME_SIZE, PHONEME_EMB), jnp.float32),
        speaker_embed=0.1 * jax.random.normal(ks[1], (SPEAKER_SIZE, SPEAKER_EMB), jnp.float32),
        w1=0.1 * jax.random.normal(ks[2], (3, CIN, HIDDEN), jnp.float32),
        b1=0.1 * jax.random.normal(ks[3], (1, HIDDEN), jnp.float32),
        w2=0.1 * jax.random.normal(ks[4], (3, HIDDEN, HIDDEN), jnp.float32),
        b2=0.1 * jax.random.normal(ks[5], (1, HIDDEN), jnp.float32),
        wp=0.1 * jax.random.normal(ks[6], (HIDDEN, 1), jnp.float32),
        bp=0.1 * jax.random.normal(ks[7], (1, 1), jnp.float32),
    )

    packed = pack_yukarin_s_params(params)        # done once, reused per call

    for L, seed, spk_id in ((8, 1, 2), (33, 2, 1)):
        phoneme_list = jax.random.randint(jax.random.PRNGKey(seed), (L,), 0,
                                          PHONEME_SIZE, dtype=jnp.int32)
        speaker_id = jnp.array([spk_id], dtype=jnp.int32)

        out = jax.block_until_ready(
            yukarin_s_forward(phoneme_list, speaker_id, packed))
        ref = _reference(phoneme_list, speaker_id, params)

        assert out.shape == (L,) and out.dtype == jnp.float32
        assert jnp.allclose(out, ref, atol=1e-5, rtol=1e-5), (L, out, ref)

    print("KERNEL_OK")
</pallas_src>

<mosaic_0001>
module attributes {stable_mosaic.version = 11 : i64} {
  func.func @kernel(%arg0: i32, %arg1: memref<1xi32, #tpu.memory_space<smem>>, %arg2: memref<1x128xi32, #tpu.memory_space<vmem>>, %arg3: memref<32x512xf32, #tpu.memory_space<vmem>>, %arg4: memref<1x128xf32, #tpu.memory_space<vmem>>) attributes {dimension_semantics = [#tpu.dimension_semantics<arbitrary>], iteration_bounds = array<i64: 1>, scalar_prefetch = 1 : i64, scratch_operands = 0 : i64, tpu.core_type = #tpu.core_type<tc>, window_params = [{pipeline_mode = #tpu.pipeline_mode<synchronous>, transform_indices = @transform_0, window_bounds = array<i64: 1, 128>}, {pipeline_mode = #tpu.pipeline_mode<synchronous>, transform_indices = @transform_1, window_bounds = array<i64: 32, 512>}, {pipeline_mode = #tpu.pipeline_mode<synchronous>, transform_indices = @transform_2, window_bounds = array<i64: 1, 128>}]} {
    %c0 = arith.constant 0 : index
    %0 = memref.load %arg1[%c0] : memref<1xi32, #tpu.memory_space<smem>>
    %1 = tpu.iota {dimensions = array<i32: 0>} : vector<128x128xi32>
    %c45_i32 = arith.constant 45 : i32
    %2 = vector.broadcast %c45_i32 : i32 to vector<128x128xi32>
    %3 = arith.cmpi slt, %1, %2 : vector<128x128xi32>
    %c0_0 = arith.constant 0 : index
    %c0_1 = arith.constant 0 : index
    %4 = vector.load %arg2[%c0_0, %c0_1] : memref<1x128xi32, #tpu.memory_space<vmem>>, vector<1x128xi32>
    %c45_i32_2 = arith.constant 45 : i32
    %5 = arith.addi %0, %c45_i32_2 : i32
    %6 = vector.shape_cast %4 : vector<1x128xi32> to vector<1x128xi32>
    %7 = vector.broadcast %6 : vector<1x128xi32> to vector<128x128xi32>
    %8 = vector.broadcast %5 : i32 to vector<128x128xi32>
    %9 = arith.select %3, %7, %8 : vector<128x128xi1>, vector<128x128xi32>
    %10 = arith.cmpi eq, %9, %1 : vector<128x128xi32>
    %11 = arith.extui %10 : vector<128x128xi1> to vector<128x128xi32>
    %12 = arith.sitofp %11 : vector<128x128xi32> to vector<128x128xf32>
    %c0_3 = arith.constant 0 : index
    %c0_4 = arith.constant 0 : index
    %13 = vector.load %arg3[%c0_3, %c0_4] : memref<32x512xf32, #tpu.memory_space<vmem>>, vector<32x128xf32>
    %cst = arith.constant dense<0.000000e+00> : vector<32x128xf32>
    %14 = tpu.matmul %13, %12, %cst {dimension_numbers = #tpu.dot_dimension_numbers<[1], [0], [0], [1], [0, 0, 1, 1], [], []>} : vector<32x128xf32>, vector<128x128xf32>, vector<32x128xf32> -> vector<32x128xf32>
    %15 = tpu.iota {dimensions = array<i32: 1>} : vector<32x128xi32>
    %c0_i32 = arith.constant 0 : i32
    %16 = vector.broadcast %c0_i32 : i32 to vector<32x128xi32>
    %17 = arith.cmpi ne, %15, %16 : vector<32x128xi32>
    %c7_i32 = arith.constant 7 : i32
    %18 = vector.broadcast %c7_i32 : i32 to vector<32x128xi32>
    %19 = arith.cmpi ne, %15, %18 : vector<32x128xi32>
    %c1_i32 = arith.constant 1 : i32
    %20 = tpu.dynamic_rotate %14 by %c1_i32 dim 1 : vector<32x128xf32>, i32 -> vector<32x128xf32>
    %cst_5 = arith.constant 0.000000e+00 : f32
    %21 = vector.broadcast %cst_5 : f32 to vector<32x128xf32>
    %22 = arith.select %17, %20, %21 : vector<32x128xi1>, vector<32x128xf32>
    %c127_i32 = arith.constant 127 : i32
    %23 = tpu.dynamic_rotate %14 by %c127_i32 dim 1 : vector<32x128xf32>, i32 -> vector<32x128xf32>
    %cst_6 = arith.constant 0.000000e+00 : f32
    %24 = vector.broadcast %cst_6 : f32 to vector<32x128xf32>
    %25 = arith.select %19, %23, %24 : vector<32x128xi1>, vector<32x128xf32>
    %26 = tpu.concatenate %22, %14, %25 in 0 : vector<32x128xf32>, vector<32x128xf32>, vector<32x128xf32> -> vector<96x128xf32>
    %c0_7 = arith.constant 0 : index
    %c128 = arith.constant 128 : index
    %27 = vector.load %arg3[%c0_7, %c128] : memref<32x512xf32, #tpu.memory_space<vmem>>, vector<32x96xf32>
    %cst_8 = arith.constant dense<0.000000e+00> : vector<32x128xf32>
    %28 = tpu.matmul %27, %26, %cst_8 {dimension_numbers = #tpu.dot_dimension_numbers<[1], [0], [0], [1], [0, 0, 1, 1], [], []>} : vector<32x96xf32>, vector<96x128xf32>, vector<32x128xf32> -> vector<32x128xf32>
    %c0_9 = arith.constant 0 : index
    %c384 = arith.constant 384 : index
    %29 = vector.load %arg3[%c0_9, %c384] : memref<32x512xf32, #tpu.memory_space<vmem>>, vector<32x1xf32>
    %30 = vector.broadcast %29 : vector<32x1xf32> to vector<32x128xf32>
    %31 = arith.addf %28, %30 : vector<32x128xf32>
    %cst_10 = arith.constant 0.000000e+00 : f32
    %32 = vector.broadcast %cst_10 : f32 to vector<32x128xf32>
    %33 = arith.maximumf %31, %32 : vector<32x128xf32>
    %c1_i32_11 = arith.constant 1 : i32
    %34 = tpu.dynamic_rotate %33 by %c1_i32_11 dim 1 : vector<32x128xf32>, i32 -> vector<32x128xf32>
    %cst_12 = arith.constant 0.000000e+00 : f32
    %35 = vector.broadcast %cst_12 : f32 to vector<32x128xf32>
    %36 = arith.select %17, %34, %35 : vector<32x128xi1>, vector<32x128xf32>
    %c127_i32_13 = arith.constant 127 : i32
    %37 = tpu.dynamic_rotate %33 by %c127_i32_13 dim 1 : vector<32x128xf32>, i32 -> vector<32x128xf32>
    %cst_14 = arith.constant 0.000000e+00 : f32
    %38 = vector.broadcast %cst_14 : f32 to vector<32x128xf32>
    %39 = arith.select %19, %37, %38 : vector<32x128xi1>, vector<32x128xf32>
    %40 = tpu.concatenate %36, %33, %39 in 0 : vector<32x128xf32>, vector<32x128xf32>, vector<32x128xf32> -> vector<96x128xf32>
    %c0_15 = arith.constant 0 : index
    %c256 = arith.constant 256 : index
    %41 = vector.load %arg3[%c0_15, %c256] : memref<32x512xf32, #tpu.memory_space<vmem>>, vector<32x96xf32>
    %cst_16 = arith.constant dense<0.000000e+00> : vector<32x128xf32>
    %42 = tpu.matmul %41, %40, %cst_16 {dimension_numbers = #tpu.dot_dimension_numbers<[1], [0], [0], [1], [0, 0, 1, 1], [], []>} : vector<32x96xf32>, vector<96x128xf32>, vector<32x128xf32> -> vector<32x128xf32>
    %c0_17 = arith.constant 0 : index
    %c385 = arith.constant 385 : index
    %43 = vector.load %arg3[%c0_17, %c385] : memref<32x512xf32, #tpu.memory_space<vmem>>, vector<32x1xf32>
    %44 = vector.broadcast %43 : vector<32x1xf32> to vector<32x128xf32>
    %45 = arith.addf %42, %44 : vector<32x128xf32>
    %cst_18 = arith.constant 0.000000e+00 : f32
    %46 = vector.broadcast %cst_18 : f32 to vector<32x128xf32>
    %47 = arith.maximumf %45, %46 : vector<32x128xf32>
    %c0_19 = arith.constant 0 : index
    %c392 = arith.constant 392 : index
    %48 = vector.load %arg3[%c0_19, %c392] : memref<32x512xf32, #tpu.memory_space<vmem>>, vector<1x32xf32>
    %c0_20 = arith.constant 0 : index
    %c386 = arith.constant 386 : index
    %49 = vector.load %arg3[%c0_20, %c386] : memref<32x512xf32, #tpu.memory_space<vmem>>, vector<1x1xf32>
    %cst_21 = arith.constant dense<0.000000e+00> : vector<1x128xf32>
    %50 = tpu.matmul %48, %47, %cst_21 {dimension_numbers = #tpu.dot_dimension_numbers<[1], [0], [0], [1], [0, 0, 1, 1], [], []>} : vector<1x32xf32>, vector<32x128xf32>, vector<1x128xf32> -> vector<1x128xf32>
    %51 = vector.broadcast %49 : vector<1x1xf32> to vector<1x128xf32>
    %52 = arith.addf %50, %51 : vector<1x128xf32>
    %c0_22 = arith.constant 0 : index
    %c0_23 = arith.constant 0 : index
    %53 = vector.load %arg4[%c0_22, %c0_23] : memref<1x128xf32, #tpu.memory_space<vmem>>, vector<1x128xf32>
    tpu.vector_store %arg4[%c0_22, %c0_23], %52 {strides = array<i32>} : memref<1x128xf32, #tpu.memory_space<vmem>>, vector<1x128xf32>,
    return
  }
  func.func @transform_0(%arg0: i32, %arg1: memref<1xi32, #tpu.memory_space<smem>>) -> (i32, i32) {
    %c0_i32 = arith.constant 0 : i32
    %c0_i32_0 = arith.constant 0 : i32
    %c0_i32_1 = arith.constant 0 : i32
    return %c0_i32, %c0_i32_0 : i32, i32
  }
  func.func @transform_1(%arg0: i32, %arg1: memref<1xi32, #tpu.memory_space<smem>>) -> (i32, i32) {
    %c0_i32 = arith.constant 0 : i32
    %c0_i32_0 = arith.constant 0 : i32
    %c0_i32_1 = arith.constant 0 : i32
    return %c0_i32, %c0_i32_0 : i32, i32
  }
  func.func @transform_2(%arg0: i32, %arg1: memref<1xi32, #tpu.memory_space<smem>>) -> (i32, i32) {
    %c0_i32 = arith.constant 0 : i32
    %c0_i32_0 = arith.constant 0 : i32
    %c0_i32_1 = arith.constant 0 : i32
    return %c0_i32, %c0_i32_0 : i32, i32
  }
}

</mosaic_0001>

<bundles_post_ra>
// kernel: tpu_custom_call.1
= control target key start
LH: loop header
LB: loop body
LE: loop exit
PB: predicated region body
PF: predicated region fallthrough
CT: control target
= control target key end

     0   :  { %9 = vsyncpa [#allocation5], 0  ;;  %s1114_s0 = inlined_call_operand.<no memory space> [shape: s32[1], index: 0, kind: input, shape index: {}]   ;;  %s1115_s1 = inlined_call_operand.vmem [shape: s32[1,128], index: 1, kind: input, shape index: {}]   ;;  %s1116_s2 = inlined_call_operand.hbm [shape: f32[32,512], index: 2, kind: input, shape index: {}]   ;;  %s1117_s3 = inlined_call_operand.hbm [shape: f32[1,128], index: 3, kind: output, shape index: {}]  }
   0x1   :  { %10 = vsyncpa [#allocation6], 0  ;;  %s909_s12 = smov [#allocation4]  }
   0x2   :  { %s18_s13 = sshll.u32 %s909_s12, 4  ;;  %s19_s13 = int_to_ptr.vmem [resolvable:$true] %s18_s13 }
   0x3   :  { %s873_s14 = scalar_lea.vmem %s19_s13, 2048  ;;  %p878_p1 = scmp.lt.s32.totalorder %s19_s13, %s19_s13 }
   0x4   :  { %p874_p0 = scmp.ne.s32.totalorder %s19_s13, %s873_s14  ;;  %p879_p2 = scmp.lt.s32.totalorder %s873_s14, %s873_s14 }
   0x6   :  { %p880_p3 = por %p879_p2, %p878_p1 }
   0x8   :  { %p881_p4 = pnand %p880_p3, %p874_p0 }
   0xa   :  { %884 = shalt.err (!%p881_p4)
}
   0xb   :  { %s910_s15 = smov 512   ;;  %s911_s16 = smov 32   ;;  %v29_v0 = vlaneseq }
   0xc   :  { %24 = dma.hbm_to_vmem [thread:$0]  %s1116_s2, 2048, %s19_s13, [#allocation5], %s910_s15, %s910_s15, %s911_s16  }
   0xd   :  { %s63_s21 = sadd.s32 45, %s1114_s0 }
   0xe   :  { %905 = dma.done.wait [#allocation5], 2048  }
   0xf   :  { %906 = vsyncadd [#allocation5], 4294965248  ;;  %v949_v1 = vshrl.u32 %v29_v0, 7  ;;  %v68_v2 = vstv %s63_s21  ;;  %v912_v7 = vmov 1.0   ;;  %v133_v8 = vld [vmem:[#allocation4] sm:$0xff]  ;;  %s914_s22 = smov 1  }
  0x10   :  { %769 = vmatprep.mubr.f32.mxu0 %v133_v8  ;;  %v622_v16 = vld [vmem:[%s1115_s1] ss:$0 sm:$0xff]  ;;  %s913_s1 = smov 127   ;;  %v250_v29 = vld [vmem:[#allocation4 + $0x8] sm:$0xff]  ;;  %v1011_v30 = vld [vmem:[#allocation4 + $0x58] sm:$0xff]  ;;  %v915_v32 = vmov 0  }
  0x11   :  { %v45_v3 = vadd.s32 120, %v949_v1  ;;  %v44_v4 = vadd.s32 112, %v949_v1  ;;  %v43_v5 = vadd.s32 104, %v949_v1  ;;  %v42_v6 = vadd.s32 96, %v949_v1  ;;  %v134_v22 = vld [vmem:[#allocation4 + $0x20] sm:$0xff]  ;;  %v1013_v31 = vld [vmem:[#allocation4 + $0x78] sm:$0xff]  ;;  %860 = vset.pattern.permute.xlu1 %v915_v32  ;;  %859 = vset.pattern.permute.xlu0 %v915_v32 }
  0x12   :  { %v41_v9 = vadd.s32 88, %v949_v1  ;;  %v40_v10 = vadd.s32 80, %v949_v1  ;;  %v39_v11 = vadd.s32 72, %v949_v1  ;;  %v38_v12 = vadd.s32 64, %v949_v1  ;;  %v135_v23 = vld [vmem:[#allocation4 + $0x40] sm:$0xff]  ;;  %v1017_v33 = vld [vmem:[#allocation4 + $0x38] sm:$0xff] }
  0x13   :  { %vm100_vm0 = vcmp.eq.s32.totalorder %v68_v2, %v45_v3  ;;  %vm99_vm1 = vcmp.eq.s32.totalorder %v68_v2, %v44_v4  ;;  %vm98_vm2 = vcmp.eq.s32.totalorder %v68_v2, %v43_v5  ;;  %vm97_vm3 = vcmp.eq.s32.totalorder %v68_v2, %v42_v6  ;;  %v136_v24 = vld [vmem:[#allocation4 + $0x60] sm:$0xff]  ;;  %v1019_v34 = vld [vmem:[#allocation4 + $0x18] sm:$0xff]  ;;  %v251_v44 = vld [vmem:[#allocation4 + $0x28] sm:$0xff]  ;;  %s917_s23 = smov 120   ;;  %s921_s24 = smov [#allocation7]  }
  0x14   :  { %737 = vmatprep.subr.msk.mxu0 %vm100_vm0, %v912_v7  ;;  %vm96_vm4 = vcmp.eq.s32.totalorder %v68_v2, %v41_v9  ;;  %vm95_vm5 = vcmp.eq.s32.totalorder %v68_v2, %v40_v10  ;;  %v35_v13 = vadd.s32 40, %v949_v1  ;;  %vm94_vm6 = vcmp.eq.s32.totalorder %v68_v2, %v39_v11  ;;  %v252_v45 = vld [vmem:[#allocation4 + $0x48] sm:$0xff]  ;;  %v404_v63 = vld [vmem:[#allocation4 + $0x10] sm:$0xff]  ;;  %s613_s25 = sshll.u32 %s921_s24, 4  ;;  %s614_s25 = int_to_ptr.vmem [resolvable:$true] %s613_s25 }
  0x15   :  { %738 = vmatpush3.msk.msra.mxu0 %vm100_vm0, %v912_v7  ;;  %v37_v14 = vadd.s32 56, %v949_v1  ;;  %vm93_vm7 = vcmp.eq.s32.totalorder %v68_v2, %v38_v12  ;;  %v36_v15 = vadd.s32 48, %v949_v1  ;;  %v34_v18 = vadd.s32 32, %v949_v1  ;;  %v253_v46 = vld [vmem:[#allocation4 + $0x68] sm:$0xff]  ;;  %v405_v10 = vld [vmem:[#allocation4 + $0x30] sm:$0xff]  ;;  %s885_s26 = scalar_lea.vmem %s614_s25, 16  ;;  %p890_p6 = scmp.lt.s32.totalorder %s614_s25, %s614_s25 }
  0x16   :  { %739 = vmatprep.subr.msk.mxu0 %vm99_vm1, %v912_v7  ;;  %vm51_vm8 = vcmp.lt.s32.totalorder %v35_v13, 45  ;;  %v33_v19 = vadd.s32 24, %v949_v1  ;;  %v32_v20 = vadd.s32 16, %v949_v1  ;;  %v31_v21 = vadd.s32 8, %v949_v1  ;;  %v406_v11 = vld [vmem:[#allocation4 + $0x50] sm:$0xff]  ;;  %p886_p5 = scmp.ne.s32.totalorder %s614_s25, %s885_s26  ;;  %s889_s27 = scalar_lea.vmem %s614_s25, 32 }
  0x17   :  { %740 = vmatpush3.msk.msra.mxu0 %vm99_vm1, %v912_v7  ;;  %vm92_vm9 = vcmp.eq.s32.totalorder %v68_v2, %v37_v14  ;;  %v74_v17 = vsel %vm51_vm8, %v622_v16, %v68_v2  ;;  %vm91_vm10 = vcmp.eq.s32.totalorder %v68_v2, %v36_v15  ;;  %vm89_vm12 = vcmp.eq.s32.totalorder %v622_v16, %v34_v18  ;;  %v407_v12 = vld [vmem:[#allocation4 + $0x70] sm:$0xff]  ;;  %p891_p7 = scmp.lt.s32.totalorder %s889_s27, %s885_s26 }
  0x18   :  { %741 = vmatprep.subr.msk.mxu0 %vm98_vm2, %v912_v7  ;;  %vm90_vm11 = vcmp.eq.s32.totalorder %v74_v17, %v35_v13  ;;  %vm88_vm13 = vcmp.eq.s32.totalorder %v622_v16, %v33_v19  ;;  %vm87_vm14 = vcmp.eq.s32.totalorder %v622_v16, %v32_v20  ;;  %vm86_vm15 = vcmp.eq.s32.totalorder %v622_v16, %v31_v21 }
  0x19   :  { %742 = vmatpush3.msk.msra.mxu0 %vm98_vm2, %v912_v7  ;;  %vm85_vm0 = vcmp.eq.s32.totalorder %v622_v16, %v949_v1  ;;  %vm278_vm1 = vcmask 785408   ;;  %v1024_v35 = vand.u32 127, %v29_v0  ;;  %v916_v0 = vmov 1   ;;  %v525_v1 = vld [vmem:[#allocation4 + $0x18] ss:$0 sm:$0xff]  ;;  %p892_p8 = por %p891_p7, %p890_p6 }
  0x1a   :  { %743 = vmatprep.subr.msk.mxu0 %vm97_vm3, %v912_v7  ;;  %799 = vmatprep.mubr.msk.f32.mxu1 %vm278_vm1, %v250_v29  ;;  %v918_v13 = vmov 0.0   ;;  %v920_v14 = vmov 2  }
  0x1b   :  { %744 = vmatpush3.msk.msra.mxu0 %vm97_vm3, %v912_v7  ;;  %vm225_vm2 = vcmp.ne.s32.totalorder %v1024_v35, 7  ;;  %vm224_vm3 = vcmp.ne.s32.totalorder %v1024_v35, 0  ;;  %p893_p9 = pnand %p892_p8, %p886_p5 }
  0x1c   :  { %745 = vmatprep.subr.msk.mxu0 %vm96_vm4, %v912_v7 }
  0x1d   :  { %746 = vmatpush3.msk.msra.mxu0 %vm96_vm4, %v912_v7  ;;  %vm919_vm4 = vmmov 0  }
  0x1e   :  { %747 = vmatprep.subr.msk.mxu0 %vm95_vm5, %v912_v7 }
  0x1f   :  { %748 = vmatpush3.msk.msra.mxu0 %vm95_vm5, %v912_v7  ;;  %vm533_vm5 = vcmask 261120  }
  0x20   :  { %749 = vmatprep.subr.msk.mxu0 %vm94_vm6, %v912_v7 }
  0x21   :  { %750 = vmatpush3.msk.msra.mxu0 %vm94_vm6, %v912_v7 }
  0x22   :  { %751 = vmatprep.subr.msk.mxu0 %vm93_vm7, %v912_v7 }
  0x23   :  { %752 = vmatpush3.msk.msra.mxu0 %vm93_vm7, %v912_v7 }
  0x24   :  { %753 = vmatprep.subr.msk.mxu0 %vm92_vm9, %v912_v7 }
  0x25   :  { %754 = vmatpush3.msk.msra.mxu0 %vm92_vm9, %v912_v7 }
  0x26   :  { %755 = vmatprep.subr.msk.mxu0 %vm91_vm10, %v912_v7 }
  0x27   :  { %756 = vmatpush3.msk.msra.mxu0 %vm91_vm10, %v912_v7 }
  0x28   :  { %757 = vmatprep.subr.msk.mxu0 %vm90_vm11, %v912_v7 }
  0x29   :  { %758 = vmatpush3.msk.msra.mxu0 %vm90_vm11, %v912_v7 }
  0x2a   :  { %759 = vmatprep.subr.msk.mxu0 %vm89_vm12, %v912_v7 }
  0x2b   :  { %760 = vmatpush3.msk.msra.mxu0 %vm89_vm12, %v912_v7 }
  0x2c   :  { %761 = vmatprep.subr.msk.mxu0 %vm88_vm13, %v912_v7 }
  0x2d   :  { %762 = vmatpush3.msk.msra.mxu0 %vm88_vm13, %v912_v7 }
  0x2e   :  { %763 = vmatprep.subr.msk.mxu0 %vm87_vm14, %v912_v7 }
  0x2f   :  { %764 = vmatpush3.msk.msra.mxu0 %vm87_vm14, %v912_v7 }
  0x30   :  { %765 = vmatprep.subr.msk.mxu0 %vm86_vm15, %v912_v7 }
  0x31   :  { %766 = vmatpush3.msk.msra.mxu0 %vm86_vm15, %v912_v7 }
  0x32   :  { %767 = vmatprep.subr.msk.mxu0 %vm85_vm0, %v912_v7 }
  0x33   :  { %768 = vmatpush3.msk.msra.mxu0 %vm85_vm0, %v912_v7 }
  0x34   :  { %770 = vmatmul.mubr.f32.vlgmr.msra.gmra.mxu0 %v134_v22  ;;  %835 = vmatprep.subr.mxu0 %v918_v13 }
  0x35   :  { %772 = vmatprep.mubr.f32.mxu0 %v135_v23 }
  0x38   :  { %773 = vmatmul.mubr.f32.gmra.mxu0 %v136_v24 }
  0x39   :  { %843 = vmatprep.mubr.msk.f32.mxu0 %vm919_vm4, %v918_v13 }
  0xf4   :  { %v771_v25 = vpop.f32.mrf.mxu0 }
  0xf5   :  { %240 = vrot.lane.b32.xlu1 %v771_v25, %s913_s1 }
  0xf6   :  { %v203_v26 = vpop.f32.mrf.mxu0 }
  0xf8   :  { %v774_v27 = vpop.f32.mrf.mxu0 }
  0xf9   :  { %238 = vrot.lane.b32.xlu1 %v203_v26, %s913_s1  ;;  %244 = vrot.lane.b32.xlu0 %v774_v27, %s913_s1 }
  0xfa   :  { %v213_v28 = vpop.f32.mrf.mxu0 }
  0xfd   :  { %230 = vrot.lane.b32.xlu1 %v213_v28, %s914_s22  ;;  %242 = vrot.lane.b32.xlu0 %v213_v28, %s913_s1 }
 0x101   :  { %226 = vrot.lane.b32.xlu1 %v203_v26, %s914_s22  ;;  %232 = vrot.lane.b32.xlu0 %v774_v27, %s914_s22 }
 0x105   :  { %228 = vrot.lane.b32.xlu0 %v771_v25, %s914_s22  ;;  %270 = vperm.xlu1 %860, %v1011_v30  }
 0x109   :  { %275 = vperm.xlu0 %859, %v1013_v31   ;;  %265 = vperm.xlu1 %860, %v1017_v33  }
 0x10d   :  { %260 = vperm.xlu0 %859, %v1019_v34   ;;  %861 = vset.pattern.permute.xlu1 %v916_v0 }
 0x111   :  { %862 = vset.pattern.permute.xlu0 %v916_v0 }
 0x167   :  { %v241_v37 = vpop.permute.xlu1 %240 }
 0x16b   :  { %v245_v36 = vpop.permute.xlu0 %244  ;;  %v239_v39 = vpop.permute.xlu1 %238 }
 0x16c   :  { %775 = vmatprep.subr.msk.mxu1 %vm225_vm2, %v245_v36 }
 0x16d   :  { %776 = vmatpush3.msk.msra.mxu1 %vm225_vm2, %v245_v36 }
 0x16f   :  { %v243_v38 = vpop.permute.xlu0 %242  ;;  %v231_v41 = vpop.permute.xlu1 %230 }
 0x170   :  { %777 = vmatprep.subr.msk.mxu1 %vm225_vm2, %v243_v38 }
 0x171   :  { %778 = vmatpush3.msk.msra.mxu1 %vm225_vm2, %v243_v38 }
 0x172   :  { %779 = vmatprep.subr.msk.mxu1 %vm225_vm2, %v241_v37 }
 0x173   :  { %780 = vmatpush3.msk.msra.mxu1 %vm225_vm2, %v241_v37  ;;  %v233_v40 = vpop.permute.xlu0 %232  ;;  %v227_v43 = vpop.permute.xlu1 %226 }
 0x174   :  { %781 = vmatprep.subr.msk.mxu1 %vm225_vm2, %v239_v39 }
 0x175   :  { %782 = vmatpush3.msk.msra.mxu1 %vm225_vm2, %v239_v39 }
 0x176   :  { %783 = vmatprep.subr.mxu1 %v774_v27 }
 0x177   :  { %784 = vmatpush3.msra.mxu1 %v774_v27  ;;  %v229_v42 = vpop.permute.xlu0 %228 }
 0x178   :  { %785 = vmatprep.subr.mxu1 %v213_v28 }
 0x179   :  { %786 = vmatpush3.msra.mxu1 %v213_v28 }
 0x17a   :  { %787 = vmatprep.subr.mxu1 %v771_v25 }
 0x17b   :  { %788 = vmatpush3.msra.mxu1 %v771_v25 }
 0x17c   :  { %789 = vmatprep.subr.mxu1 %v203_v26 }
 0x17d   :  { %790 = vmatpush3.msra.mxu1 %v203_v26 }
 0x17e   :  { %791 = vmatprep.subr.msk.mxu1 %vm224_vm3, %v233_v40 }
 0x17f   :  { %792 = vmatpush3.msk.msra.mxu1 %vm224_vm3, %v233_v40 }
 0x180   :  { %793 = vmatprep.subr.msk.mxu1 %vm224_vm3, %v231_v41  ;;  %v271_v47 = vpop.permute.xlu1 %270 }
 0x181   :  { %794 = vmatpush3.msk.msra.mxu1 %vm224_vm3, %v231_v41 }
 0x182   :  { %795 = vmatprep.subr.msk.mxu1 %vm224_vm3, %v229_v42 }
 0x183   :  { %796 = vmatpush3.msk.msra.mxu1 %vm224_vm3, %v229_v42 }
 0x184   :  { %797 = vmatprep.subr.msk.mxu1 %vm224_vm3, %v227_v43  ;;  %v276_v48 = vpop.permute.xlu0 %275  ;;  %v266_v51 = vpop.permute.xlu1 %265 }
 0x185   :  { %798 = vmatpush3.msk.msra.mxu1 %vm224_vm3, %v227_v43 }
 0x186   :  { %800 = vmatmul.mubr.msk.f32.vlgmr.msra.gmra.mxu1 %vm278_vm1, %v251_v44 }
 0x187   :  { %802 = vmatprep.mubr.msk.f32.mxu1 %vm278_vm1, %v252_v45 }
 0x188   :  { %v261_v54 = vpop.permute.xlu0 %260 }
 0x18a   :  { %803 = vmatmul.mubr.msk.f32.gmra.mxu1 %vm278_vm1, %v253_v46 }
 0x18b   :  { %829 = vmatprep.mubr.msk.f32.mxu1 %vm278_vm1, %v404_v63 }
 0x246   :  { %v801_v49 = vpop.f32.mrf.mxu1 }
 0x247   :  { %v363_v56 = vadd.f32 %v801_v49, %v266_v51 }
 0x248   :  { %v357_v50 = vpop.f32.mrf.mxu1 }
 0x249   :  { %v358_v59 = vadd.f32 %v357_v50, %v261_v54  ;;  %v377_v61 = vmax.f32 %v363_v56, 0.0 }
 0x24a   :  { %v804_v52 = vpop.f32.mrf.mxu1 }
 0x24b   :  { %v373_v53 = vadd.f32 %v804_v52, %v276_v48  ;;  %v376_v62 = vmax.f32 %v358_v59, 0.0 }
 0x24c   :  { %v367_v55 = vpop.f32.mrf.mxu1 }
 0x24d   :  { %v379_v57 = vmax.f32 %v373_v53, 0.0  ;;  %v368_v58 = vadd.f32 %v367_v55, %v271_v47 }
 0x24f   :  { %v378_v60 = vmax.f32 %v368_v58, 0.0  ;;  %398 = vrot.lane.b32.xlu1 %v379_v57, %s913_s1 }
 0x251   :  { %396 = vrot.lane.b32.xlu0 %v378_v60, %s913_s1 }
 0x253   :  { %394 = vrot.lane.b32.xlu1 %v377_v61, %s913_s1 }
 0x255   :  { %392 = vrot.lane.b32.xlu0 %v376_v62, %s913_s1 }
 0x257   :  { %386 = vrot.lane.b32.xlu1 %v379_v57, %s914_s22 }
 0x259   :  { %384 = vrot.lane.b32.xlu0 %v378_v60, %s914_s22 }
 0x25b   :  { %382 = vrot.lane.b32.xlu1 %v377_v61, %s914_s22 }
 0x25d   :  { %380 = vrot.lane.b32.xlu0 %v376_v62, %s914_s22 }
 0x25f   :  { %421 = vperm.xlu1 %861, %v1013_v31  }
 0x261   :  { %417 = vperm.xlu0 %862, %v1011_v30  }
 0x263   :  { %413 = vperm.xlu1 %861, %v1017_v33  }
 0x265   :  { %531 = vrot.lane.b32.xlu0 %v525_v1, %s917_s23 }
 0x266   :  { %864 = vset.pattern.permute.xlu0 %v920_v14 }
 0x267   :  { %409 = vperm.xlu1 %861, %v1019_v34  }
 0x26b   :  { %863 = vset.pattern.permute.xlu1 %v920_v14 }
 0x26c   :  { %528 = vperm.xlu1 %863, %v525_v1  }
 0x2c1   :  { %v399_v2 = vpop.permute.xlu1 %398 }
 0x2c2   :  { %805 = vmatprep.subr.msk.mxu1 %vm225_vm2, %v399_v2 }
 0x2c3   :  { %806 = vmatpush3.msk.msra.mxu1 %vm225_vm2, %v399_v2  ;;  %v397_v3 = vpop.permute.xlu0 %396 }
 0x2c4   :  { %807 = vmatprep.subr.msk.mxu1 %vm225_vm2, %v397_v3 }
 0x2c5   :  { %v395_v4 = vpop.permute.xlu1 %394  ;;  %808 = vmatpush3.msk.msra.mxu1 %vm225_vm2, %v397_v3 }
 0x2c6   :  { %809 = vmatprep.subr.msk.mxu1 %vm225_vm2, %v395_v4 }
 0x2c7   :  { %810 = vmatpush3.msk.msra.mxu1 %vm225_vm2, %v395_v4  ;;  %v393_v5 = vpop.permute.xlu0 %392 }
 0x2c8   :  { %811 = vmatprep.subr.msk.mxu1 %vm225_vm2, %v393_v5 }
 0x2c9   :  { %812 = vmatpush3.msk.msra.mxu1 %vm225_vm2, %v393_v5  ;;  %v387_v6 = vpop.permute.xlu1 %386 }
 0x2ca   :  { %813 = vmatprep.subr.mxu1 %v379_v57 }
 0x2cb   :  { %814 = vmatpush3.msra.mxu1 %v379_v57  ;;  %v385_v7 = vpop.permute.xlu0 %384 }
 0x2cc   :  { %815 = vmatprep.subr.mxu1 %v378_v60 }
 0x2cd   :  { %816 = vmatpush3.msra.mxu1 %v378_v60  ;;  %v383_v8 = vpop.permute.xlu1 %382 }
 0x2ce   :  { %817 = vmatprep.subr.mxu1 %v377_v61 }
 0x2cf   :  { %818 = vmatpush3.msra.mxu1 %v377_v61  ;;  %v381_v9 = vpop.permute.xlu0 %380 }
 0x2d0   :  { %819 = vmatprep.subr.mxu1 %v376_v62 }
 0x2d1   :  { %820 = vmatpush3.msra.mxu1 %v376_v62 }
 0x2d2   :  { %821 = vmatprep.subr.msk.mxu1 %vm224_vm3, %v387_v6 }
 0x2d3   :  { %822 = vmatpush3.msk.msra.mxu1 %vm224_vm3, %v387_v6 }
 0x2d4   :  { %823 = vmatprep.subr.msk.mxu1 %vm224_vm3, %v385_v7 }
 0x2d5   :  { %824 = vmatpush3.msk.msra.mxu1 %vm224_vm3, %v385_v7 }
 0x2d6   :  { %825 = vmatprep.subr.msk.mxu1 %vm224_vm3, %v383_v8 }
 0x2d7   :  { %826 = vmatpush3.msk.msra.mxu1 %vm224_vm3, %v383_v8 }
 0x2d8   :  { %827 = vmatprep.subr.msk.mxu1 %vm224_vm3, %v381_v9 }
 0x2d9   :  { %828 = vmatpush3.msk.msra.mxu1 %vm224_vm3, %v381_v9 }
 0x2da   :  { %830 = vmatmul.mubr.msk.f32.vlgmr.msra.gmra.mxu1 %vm278_vm1, %v405_v10  ;;  %v422_v15 = vpop.permute.xlu1 %421 }
 0x2db   :  { %832 = vmatprep.mubr.msk.f32.mxu1 %vm278_vm1, %v406_v11 }
 0x2dc   :  { %v418_v20 = vpop.permute.xlu0 %417 }
 0x2de   :  { %833 = vmatmul.mubr.msk.f32.gmra.mxu1 %vm278_vm1, %v407_v12  ;;  %v414_v16 = vpop.permute.xlu1 %413 }
 0x2e0   :  { %v532_v31 = vpop.permute.xlu0 %531 }
 0x2e2   :  { %v410_v22 = vpop.permute.xlu1 %409 }
 0x2e7   :  { %v529_v32 = vpop.permute.xlu1 %528 }
 0x39a   :  { %v831_v17 = vpop.f32.mrf.mxu1 }
 0x39b   :  { %v508_v24 = vadd.f32 %v831_v17, %v414_v16 }
 0x39c   :  { %v502_v18 = vpop.f32.mrf.mxu1 }
 0x39d   :  { %v503_v27 = vadd.f32 %v502_v18, %v410_v22  ;;  %v522_v29 = vmax.f32 %v508_v24, 0.0 }
 0x39e   :  { %v834_v19 = vpop.f32.mrf.mxu1 }
 0x39f   :  { %v518_v21 = vadd.f32 %v834_v19, %v422_v15  ;;  %v521_v30 = vmax.f32 %v503_v27, 0.0 }
 0x3a0   :  { %v512_v23 = vpop.f32.mrf.mxu1 }
 0x3a1   :  { %v524_v25 = vmax.f32 %v518_v21, 0.0  ;;  %v513_v26 = vadd.f32 %v512_v23, %v418_v20 }
 0x3a3   :  { %v523_v28 = vmax.f32 %v513_v26, 0.0  ;;  %836 = vmatpush3.msra.mxu0 %v524_v25 }
 0x3a4   :  { %837 = vmatprep.subr.mxu0 %v918_v13 }
 0x3a5   :  { %838 = vmatpush3.msra.mxu0 %v523_v28 }
 0x3a6   :  { %839 = vmatprep.subr.mxu0 %v918_v13 }
 0x3a7   :  { %840 = vmatpush3.msra.mxu0 %v522_v29 }
 0x3a8   :  { %841 = vmatprep.subr.mxu0 %v918_v13 }
 0x3a9   :  { %842 = vmatpush3.msra.mxu0 %v521_v30 }
 0x3aa   :  { %844 = vmatmul.mubr.msk.f32.vlgmr.msra.gmra.mxu0 %vm533_vm5, %v532_v31 }
 0x46a   :  { %v602_v33 = vpop.f32.mrf.mxu0 }
 0x46b   :  { %v603_v34 = vadd.f32 %v602_v33, %v529_v32 }
 0x46c   :  { %v845_v35 = vpop.f32.mrf.mxu0 }
 0x46d   :  { %606 = vst [vmem:[#allocation7] sm:$0x1] %v603_v34 }
 0x46e   :  { %896 = shalt.err (!%p893_p9)
}
 0x46f   :  { %616 = dma.vmem_to_hbm [thread:$0]  %s614_s25, 16, %s1117_s3, [#allocation6]  }
 0x470   :  { %907 = dma.done.wait [#allocation6], 16  }
 0x471   :  { %908 = vsyncadd [#allocation6], 4294967280 }
 0x472   :  { %620 = vsyncpa [#allocation5], 1 }
 0x473   :  { %621 = vsyncpa [#allocation6], 1 }

</bundles_post_ra>
